<compile_context>
chip_gen: v5e
topology: v5e:2x2
jax: 0.10.0
libtpu: 0.0.40
codegen_flags: <defaults>
</compile_context>

<pallas_src>
import functools

import jax
import jax.numpy as jnp
from jax.experimental import pallas as pl
from jax.experimental.pallas import tpu as pltpu


_TARGET_ROWS = 8192                 # matmul rows (TB*L) per grid step (amortize ~600-cycle step cost)
_ACT_BUDGET = 20 * 1024 * 1024      # f32 in-kernel activation budget per grid step
_VMEM_LIMIT = 40 * 1024 * 1024      # explicit scoped-VMEM limit (safe on v5e/v6e/v7x)


def _round_up(x, m):
    return ((x + m - 1) // m) * m


def _choose_tb(B, L, Lp, CP):
    """Pick the batch tile TB (always a multiple of 8).

    Target >= ~8192 matmul rows (TB*L) per grid step, bounded by a ~20 MiB f32
    activation budget (one-hot over the halo + live shifted windows + conv
    outputs, counting 128-lane vreg padding), and capped so batches >= 16 keep
    at least 2 grid steps (v7x megacore sharding of the "parallel" axis)."""
    per_batch = 4 * CP * (Lp + 6 * L)
    budget_tb = max(8, _ACT_BUDGET // max(per_batch, 1))
    target_tb = max(8, pl.cdiv(_TARGET_ROWS, max(L, 1)))
    tb = min(budget_tb, target_tb)
    if B >= 16:
        tb = min(tb, max(8, (B // 2) // 8 * 8))
    tb = min(tb, _round_up(B, 8))
    return max(8, (tb // 8) * 8)


def _char_cnn_kernel(ids_ref, wf_ref, cb_ref, lw_ref, lb_ref, o_ref,
                     *, K, L, event_dim):
    """Fused embedding+conv (K tap matmuls on one shared one-hot) + global max
    pool + linear + masked log-softmax for one batch tile."""
    _, Lp, TB = ids_ref.shape          # Lp = L + K - 1 (halo), TB % 8 == 0
    _, CP, C = wf_ref.shape            # per-tap folded weight (lane-dense CP)
    OUTP = o_ref.shape[1]              # lane-padded output width

    # ids for this tile, position-major: element (p, b) <-> halo position p,
    # batch element b; -1 is the padding sentinel (conv halo + batch pad).
    ids = ids_ref[0]                                            # (Lp, TB) int32

    # One-hot over the conv halo: ONE iota + compare + select pass (the previous
    # revision did K compares + (K-1) ORs).  Sentinel rows stay all-zero, which
    # after the matmuls is exactly the conv's zero padding / batch padding.
    col = jax.lax.broadcasted_iota(jnp.int32, (Lp, TB, CP), 2)
    oh = jnp.where(ids[:, :, None] == col, 1.0, 0.0)            # (Lp, TB, CP) f32
    oh = oh.reshape(Lp * TB, CP)                                # layout no-op (TB % 8 == 0)

    # Embedding + conv tap k folded into wf[k] (built once in the wrapper); the
    # K taps become K accumulated lane-dense MXU matmuls over sublane-ALIGNED
    # shifted windows of the single one-hot.
    y = None
    for k in range(K):                                          # K static & small -> unrolled
        win = oh[k * TB:(k + L) * TB, :]                        # (L*TB, CP) aligned static slice
        part = jnp.dot(win, wf_ref[k],
                       preferred_element_type=jnp.float32)      # (L*TB, C)
        y = part if y is None else y + part

    # AdaptiveMaxPool1d(1): global max over L; conv bias added after the pool
    # (max(x + b) == max(x) + b per channel, exact).
    pooled = jnp.max(y.reshape(L, TB, C), axis=0) + cb_ref[...]     # (TB, C)

    # Linear(C -> event_dim); weights lane-padded to OUTP.
    logits = jnp.dot(pooled, lw_ref[...],
                     preferred_element_type=jnp.float32) + lb_ref[...]   # (TB, OUTP)

    # LogSoftmax over the valid columns only (the rest is lane padding).
    ocol = jax.lax.broadcasted_iota(jnp.int32, (TB, OUTP), 1)
    valid = ocol < event_dim
    z = jnp.where(valid, logits, jnp.float32(-1e30))
    m = jnp.max(z, axis=1, keepdims=True)
    zc = z - m
    s = jnp.sum(jnp.where(valid, jnp.exp(zc), 0.0), axis=1, keepdims=True)
    o_ref[...] = zc - jnp.log(s)


def _fold_params(emb_table, conv_w, conv_b, lin_w, lin_b):
    """One-time folding/padding of the module parameters (hoisted out of the
    per-call path)."""
    C, E, K = conv_w.shape
    char_dim = emb_table.shape[0]
    event_dim = lin_w.shape[0]
    CP = _round_up(char_dim, 128)          # lane-dense one-hot / contraction width
    OUTP = _round_up(event_dim, 128)       # lane-padded output width

    # Per-tap fused embedding+conv weight: wf[k, v, c] = sum_e emb[v,e]*conv_w[c,e,k].
    wf = jnp.einsum('ve,cek->kvc',
                    emb_table.astype(jnp.float32),
                    conv_w.astype(jnp.float32),
                    precision=jax.lax.Precision.HIGHEST)        # (K, char_dim, C)
    wf = jnp.pad(wf, ((0, 0), (0, CP - char_dim), (0, 0)))      # (K, CP, C)

    cb = conv_b.astype(jnp.float32).reshape(1, C)               # (1, C)
    lw = jnp.pad(jnp.transpose(lin_w).astype(jnp.float32),
                 ((0, 0), (0, OUTP - event_dim)))               # (C, OUTP)
    lb = jnp.pad(lin_b.astype(jnp.float32).reshape(1, event_dim),
                 ((0, 0), (0, OUTP - event_dim)))               # (1, OUTP)
    return (wf, cb, lw, lb), K, event_dim


def _char_cnn_call(x_ids, wf, cb, lw, lb, *, K, event_dim):
    """Run the Pallas kernel: (B, L) int ids -> (B, event_dim) log-probs."""
    B, L = x_ids.shape
    _, CP, C = wf.shape
    OUTP = lw.shape[1]
    pad = (K - 1) // 2                      # padding=2 for kernel=5
    Lp = L + 2 * pad                        # == L + K - 1

    TB = _choose_tb(B, L, Lp, CP)
    nblk = pl.cdiv(B, TB)
    Bp = nblk * TB

    # int32 ids; -1 sentinel for both the conv halo (zero padding) and batch pad.
    ids = jnp.pad(x_ids.astype(jnp.int32), ((0, Bp - B), (pad, pad)),
                  constant_values=-1)                           # (Bp, Lp)
    # Position-major per-tile layout: block i holds ids[i*TB + b, p] at [i, p, b].
    ids = jnp.transpose(ids.reshape(nblk, TB, Lp), (0, 2, 1))   # (nblk, Lp, TB)

    kernel = functools.partial(_char_cnn_kernel, K=K, L=L, event_dim=event_dim)

    out = pl.pallas_call(
        kernel,
        out_shape=jax.ShapeDtypeStruct((Bp, OUTP), jnp.float32),
        grid=(nblk,),
        in_specs=[
            pl.BlockSpec((1, Lp, TB), lambda i: (i, 0, 0)),     # ids (compact int32 tile)
            pl.BlockSpec((K, CP, C), lambda i: (0, 0, 0)),      # per-tap folded emb+conv weight
            pl.BlockSpec((1, C), lambda i: (0, 0)),             # conv bias
            pl.BlockSpec((C, OUTP), lambda i: (0, 0)),          # linear weight (lane-padded)
            pl.BlockSpec((1, OUTP), lambda i: (0, 0)),          # linear bias (lane-padded)
        ],
        out_specs=pl.BlockSpec((TB, OUTP), lambda i: (i, 0)),
        compiler_params=pltpu.CompilerParams(
            dimension_semantics=("parallel",),
            vmem_limit_bytes=_VMEM_LIMIT),
    )(ids, wf, cb, lw, lb)

    return out[:B, :event_dim]


def make_char_cnn_pretrain(emb_table, conv_w, conv_b, lin_w, lin_b):
    """Fold/pad the parameters once and return a jitted forward fn over ids.

    Args (PyTorch layouts):
      emb_table: (char_dim, 16) f32, conv_w: (64, 16, 5) f32, conv_b: (64,) f32,
      lin_w: (event_dim, 64) f32, lin_b: (event_dim,) f32.
    """
    (wf, cb, lw, lb), K, event_dim = _fold_params(emb_table, conv_w, conv_b,
                                                  lin_w, lin_b)

    @jax.jit
    def forward(x_ids):
        return _char_cnn_call(x_ids, wf, cb, lw, lb, K=K, event_dim=event_dim)

    return forward


def char_cnn_pretrain_forward(x_ids, emb_table, conv_w, conv_b, lin_w, lin_b):
    """Convenience one-shot wrapper (re-folds the parameters on every call)."""
    (wf, cb, lw, lb), K, event_dim = _fold_params(emb_table, conv_w, conv_b,
                                                  lin_w, lin_b)
    return _char_cnn_call(x_ids, wf, cb, lw, lb, K=K, event_dim=event_dim)


def _reference_forward(x_ids, emb_table, conv_w, conv_b, lin_w, lin_b):
    """Pure-JAX reference matching the PyTorch forward exactly."""
    pad = (conv_w.shape[2] - 1) // 2
    xe = jnp.take(emb_table, x_ids, axis=0)                     # (B, L, E)
    xc = jnp.transpose(xe, (0, 2, 1))                           # (B, E, L)
    y = jax.lax.conv_general_dilated(
        xc, conv_w, window_strides=(1,), padding=((pad, pad),),
        dimension_numbers=("NCH", "OIH", "NCH"),
        precision=jax.lax.Precision.HIGHEST)                    # (B, C, L)
    y = y + conv_b[None, :, None]
    pooled = jnp.max(y, axis=2)                                 # (B, C)
    logits = jnp.dot(pooled, lin_w.T,
                     precision=jax.lax.Precision.HIGHEST) + lin_b
    return jax.nn.log_softmax(logits, axis=1)


if __name__ == "__main__":
    # Small, deterministic problem consistent with the module.
    B, L = 2, 8
    char_dim, event_dim = 20, 10
    E, C_out, K = 16, 64, 5

    key = jax.random.PRNGKey(0)
    k_ids, k_emb, k_cw, k_cb, k_lw, k_lb, k_ids2 = jax.random.split(key, 7)

    x_ids = jax.random.randint(k_ids, (B, L), 0, char_dim, dtype=jnp.int32)
    emb_table = jax.random.normal(k_emb, (char_dim, E), jnp.float32) * 0.1
    conv_w = jax.random.normal(k_cw, (C_out, E, K), jnp.float32) * 0.1
    conv_b = jax.random.normal(k_cb, (C_out,), jnp.float32) * 0.1
    lin_w = jax.random.normal(k_lw, (event_dim, C_out), jnp.float32) * 0.1
    lin_b = jax.random.normal(k_lb, (event_dim,), jnp.float32) * 0.1

    forward = make_char_cnn_pretrain(emb_table, conv_w, conv_b, lin_w, lin_b)

    out = jax.block_until_ready(forward(x_ids))
    ref = _reference_forward(x_ids, emb_table, conv_w, conv_b, lin_w, lin_b)
    assert out.shape == (B, event_dim)
    assert jnp.allclose(out, ref, atol=2e-4, rtol=2e-4), "mismatch (small batch)"

    # Second shape: exercises multi-step batch tiling and batch/halo padding.
    B2, L2 = 20, 9
    x_ids2 = jax.random.randint(k_ids2, (B2, L2), 0, char_dim, dtype=jnp.int32)
    out2 = jax.block_until_ready(forward(x_ids2))
    ref2 = _reference_forward(x_ids2, emb_table, conv_w, conv_b, lin_w, lin_b)
    assert out2.shape == (B2, event_dim)
    assert jnp.allclose(out2, ref2, atol=2e-4, rtol=2e-4), "mismatch (tiled batch)"

    print("KERNEL_OK")
</pallas_src>

<mosaic_0001>
module attributes {stable_mosaic.version = 11 : i64} {
  func.func @_char_cnn_kernel(%arg0: i32, %arg1: memref<1x12x8xi32, #tpu.memory_space<vmem>>, %arg2: memref<5x128x64xf32, #tpu.memory_space<vmem>>, %arg3: memref<1x64xf32, #tpu.memory_space<vmem>>, %arg4: memref<64x128xf32, #tpu.memory_space<vmem>>, %arg5: memref<1x128xf32, #tpu.memory_space<vmem>>, %arg6: memref<8x128xf32, #tpu.memory_space<vmem>>) attributes {dimension_semantics = [#tpu.dimension_semantics<parallel>], iteration_bounds = array<i64: 1>, scalar_prefetch = 0 : i64, scratch_operands = 0 : i64, tpu.core_type = #tpu.core_type<tc>, window_params = [{transform_indices = @transform_0, window_bounds = array<i64: 1, 12, 8>}, {pipeline_mode = #tpu.pipeline_mode<synchronous>, transform_indices = @transform_1, window_bounds = array<i64: 5, 128, 64>}, {pipeline_mode = #tpu.pipeline_mode<synchronous>, transform_indices = @transform_2, window_bounds = array<i64: 1, 64>}, {pipeline_mode = #tpu.pipeline_mode<synchronous>, transform_indices = @transform_3, window_bounds = array<i64: 64, 128>}, {pipeline_mode = #tpu.pipeline_mode<synchronous>, transform_indices = @transform_4, window_bounds = array<i64: 1, 128>}, {transform_indices = @transform_5, window_bounds = array<i64: 8, 128>}]} {
    %c0 = arith.constant 0 : index
    %c0_0 = arith.constant 0 : index
    %c0_1 = arith.constant 0 : index
    %0 = vector.load %arg1[%c0, %c0_0, %c0_1] : memref<1x12x8xi32, #tpu.memory_space<vmem>>, vector<1x12x8xi32>
    %1 = vector.shape_cast %0 : vector<1x12x8xi32> to vector<12x8xi32>
    %2 = tpu.iota {dimensions = array<i32: 2>} : vector<12x8x128xi32>
    %3 = vector.shape_cast %1 : vector<12x8xi32> to vector<12x8x1xi32>
    %4 = vector.broadcast %3 : vector<12x8x1xi32> to vector<12x8x128xi32>
    %5 = arith.cmpi eq, %4, %2 : vector<12x8x128xi32>
    %cst = arith.constant 1.000000e+00 : f32
    %cst_2 = arith.constant 0.000000e+00 : f32
    %6 = vector.broadcast %cst : f32 to vector<12x8x128xf32>
    %7 = vector.broadcast %cst_2 : f32 to vector<12x8x128xf32>
    %8 = arith.select %5, %6, %7 : vector<12x8x128xi1>, vector<12x8x128xf32>
    %9 = vector.shape_cast %8 : vector<12x8x128xf32> to vector<96x128xf32>
    %10 = vector.extract_strided_slice %9 {offsets = [0, 0], sizes = [64, 128], strides = [1, 1]} : vector<96x128xf32> to vector<64x128xf32>
    %c0_3 = arith.constant 0 : index
    %c0_4 = arith.constant 0 : index
    %c0_5 = arith.constant 0 : index
    %11 = vector.load %arg2[%c0_3, %c0_4, %c0_5] : memref<5x128x64xf32, #tpu.memory_space<vmem>>, vector<1x128x64xf32>
    %12 = vector.shape_cast %11 : vector<1x128x64xf32> to vector<128x64xf32>
    %cst_6 = arith.constant dense<0.000000e+00> : vector<64x64xf32>
    %13 = tpu.matmul %10, %12, %cst_6 {dimension_numbers = #tpu.dot_dimension_numbers<[1], [0], [0], [1], [0, 0, 1, 1], [], []>} : vector<64x128xf32>, vector<128x64xf32>, vector<64x64xf32> -> vector<64x64xf32>
    %14 = vector.extract_strided_slice %9 {offsets = [8, 0], sizes = [64, 128], strides = [1, 1]} : vector<96x128xf32> to vector<64x128xf32>
    %c1 = arith.constant 1 : index
    %c0_7 = arith.constant 0 : index
    %c0_8 = arith.constant 0 : index
    %15 = vector.load %arg2[%c1, %c0_7, %c0_8] : memref<5x128x64xf32, #tpu.memory_space<vmem>>, vector<1x128x64xf32>
    %16 = vector.shape_cast %15 : vector<1x128x64xf32> to vector<128x64xf32>
    %cst_9 = arith.constant dense<0.000000e+00> : vector<64x64xf32>
    %17 = tpu.matmul %14, %16, %cst_9 {dimension_numbers = #tpu.dot_dimension_numbers<[1], [0], [0], [1], [0, 0, 1, 1], [], []>} : vector<64x128xf32>, vector<128x64xf32>, vector<64x64xf32> -> vector<64x64xf32>
    %18 = arith.addf %13, %17 : vector<64x64xf32>
    %19 = vector.extract_strided_slice %9 {offsets = [16, 0], sizes = [64, 128], strides = [1, 1]} : vector<96x128xf32> to vector<64x128xf32>
    %c2 = arith.constant 2 : index
    %c0_10 = arith.constant 0 : index
    %c0_11 = arith.constant 0 : index
    %20 = vector.load %arg2[%c2, %c0_10, %c0_11] : memref<5x128x64xf32, #tpu.memory_space<vmem>>, vector<1x128x64xf32>
    %21 = vector.shape_cast %20 : vector<1x128x64xf32> to vector<128x64xf32>
    %cst_12 = arith.constant dense<0.000000e+00> : vector<64x64xf32>
    %22 = tpu.matmul %19, %21, %cst_12 {dimension_numbers = #tpu.dot_dimension_numbers<[1], [0], [0], [1], [0, 0, 1, 1], [], []>} : vector<64x128xf32>, vector<128x64xf32>, vector<64x64xf32> -> vector<64x64xf32>
    %23 = arith.addf %18, %22 : vector<64x64xf32>
    %24 = vector.extract_strided_slice %9 {offsets = [24, 0], sizes = [64, 128], strides = [1, 1]} : vector<96x128xf32> to vector<64x128xf32>
    %c3 = arith.constant 3 : index
    %c0_13 = arith.constant 0 : index
    %c0_14 = arith.constant 0 : index
    %25 = vector.load %arg2[%c3, %c0_13, %c0_14] : memref<5x128x64xf32, #tpu.memory_space<vmem>>, vector<1x128x64xf32>
    %26 = vector.shape_cast %25 : vector<1x128x64xf32> to vector<128x64xf32>
    %cst_15 = arith.constant dense<0.000000e+00> : vector<64x64xf32>
    %27 = tpu.matmul %24, %26, %cst_15 {dimension_numbers = #tpu.dot_dimension_numbers<[1], [0], [0], [1], [0, 0, 1, 1], [], []>} : vector<64x128xf32>, vector<128x64xf32>, vector<64x64xf32> -> vector<64x64xf32>
    %28 = arith.addf %23, %27 : vector<64x64xf32>
    %29 = vector.extract_strided_slice %9 {offsets = [32, 0], sizes = [64, 128], strides = [1, 1]} : vector<96x128xf32> to vector<64x128xf32>
    %c4 = arith.constant 4 : index
    %c0_16 = arith.constant 0 : index
    %c0_17 = arith.constant 0 : index
    %30 = vector.load %arg2[%c4, %c0_16, %c0_17] : memref<5x128x64xf32, #tpu.memory_space<vmem>>, vector<1x128x64xf32>
    %31 = vector.shape_cast %30 : vector<1x128x64xf32> to vector<128x64xf32>
    %cst_18 = arith.constant dense<0.000000e+00> : vector<64x64xf32>
    %32 = tpu.matmul %29, %31, %cst_18 {dimension_numbers = #tpu.dot_dimension_numbers<[1], [0], [0], [1], [0, 0, 1, 1], [], []>} : vector<64x128xf32>, vector<128x64xf32>, vector<64x64xf32> -> vector<64x64xf32>
    %33 = arith.addf %28, %32 : vector<64x64xf32>
    %34 = vector.shape_cast %33 : vector<64x64xf32> to vector<8x8x64xf32>
    %cst_19 = arith.constant dense<0xFF800000> : vector<8x64xf32>
    %35 = vector.multi_reduction <maximumf>, %34, %cst_19 [0] : vector<8x8x64xf32> to vector<8x64xf32>
    %c0_20 = arith.constant 0 : index
    %c0_21 = arith.constant 0 : index
    %36 = vector.load %arg3[%c0_20, %c0_21] : memref<1x64xf32, #tpu.memory_space<vmem>>, vector<1x64xf32>
    %37 = vector.broadcast %36 : vector<1x64xf32> to vector<8x64xf32>
    %38 = arith.addf %35, %37 : vector<8x64xf32>
    %c0_22 = arith.constant 0 : index
    %c0_23 = arith.constant 0 : index
    %39 = vector.load %arg4[%c0_22, %c0_23] : memref<64x128xf32, #tpu.memory_space<vmem>>, vector<64x128xf32>
    %cst_24 = arith.constant dense<0.000000e+00> : vector<8x128xf32>
    %40 = tpu.matmul %38, %39, %cst_24 {dimension_numbers = #tpu.dot_dimension_numbers<[1], [0], [0], [1], [0, 0, 1, 1], [], []>} : vector<8x64xf32>, vector<64x128xf32>, vector<8x128xf32> -> vector<8x128xf32>
    %c0_25 = arith.constant 0 : index
    %c0_26 = arith.constant 0 : index
    %41 = vector.load %arg5[%c0_25, %c0_26] : memref<1x128xf32, #tpu.memory_space<vmem>>, vector<1x128xf32>
    %42 = vector.broadcast %41 : vector<1x128xf32> to vector<8x128xf32>
    %43 = arith.addf %40, %42 : vector<8x128xf32>
    %44 = tpu.iota {dimensions = array<i32: 1>} : vector<8x128xi32>
    %c10_i32 = arith.constant 10 : i32
    %45 = vector.broadcast %c10_i32 : i32 to vector<8x128xi32>
    %46 = arith.cmpi slt, %44, %45 : vector<8x128xi32>
    %cst_27 = arith.constant -1.000000e+30 : f32
    %47 = vector.broadcast %cst_27 : f32 to vector<8x128xf32>
    %48 = arith.select %46, %43, %47 : vector<8x128xi1>, vector<8x128xf32>
    %cst_28 = arith.constant dense<0xFF800000> : vector<8xf32>
    %49 = vector.multi_reduction <maximumf>, %48, %cst_28 [1] : vector<8x128xf32> to vector<8xf32>
    %50 = vector.shape_cast %49 : vector<8xf32> to vector<8x1xf32>
    %51 = vector.broadcast %50 : vector<8x1xf32> to vector<8x128xf32>
    %52 = arith.subf %48, %51 : vector<8x128xf32>
    %53 = math.exp %52 : vector<8x128xf32>
    %cst_29 = arith.constant 0.000000e+00 : f32
    %54 = vector.broadcast %cst_29 : f32 to vector<8x128xf32>
    %55 = arith.select %46, %53, %54 : vector<8x128xi1>, vector<8x128xf32>
    %cst_30 = arith.constant dense<0.000000e+00> : vector<8xf32>
    %56 = vector.multi_reduction <add>, %55, %cst_30 [1] : vector<8x128xf32> to vector<8xf32>
    %57 = vector.shape_cast %56 : vector<8xf32> to vector<8x1xf32>
    %58 = math.log %57 : vector<8x1xf32>
    %59 = vector.broadcast %58 : vector<8x1xf32> to vector<8x128xf32>
    %60 = arith.subf %52, %59 : vector<8x128xf32>
    %c0_31 = arith.constant 0 : index
    %c0_32 = arith.constant 0 : index
    %61 = vector.load %arg6[%c0_31, %c0_32] : memref<8x128xf32, #tpu.memory_space<vmem>>, vector<8x128xf32>
    tpu.vector_store %arg6[%c0_31, %c0_32], %60 {strides = array<i32>} : memref<8x128xf32, #tpu.memory_space<vmem>>, vector<8x128xf32>,
    return
  }
  func.func @transform_0(%arg0: i32) -> (i32, i32, i32) {
    %c0_i32 = arith.constant 0 : i32
    %c0_i32_0 = arith.constant 0 : i32
    %c0_i32_1 = arith.constant 0 : i32
    return %arg0, %c0_i32, %c0_i32_0 : i32, i32, i32
  }
  func.func @transform_1(%arg0: i32) -> (i32, i32, i32) {
    %c0_i32 = arith.constant 0 : i32
    %c0_i32_0 = arith.constant 0 : i32
    %c0_i32_1 = arith.constant 0 : i32
    %c0_i32_2 = arith.constant 0 : i32
    return %c0_i32, %c0_i32_0, %c0_i32_1 : i32, i32, i32
  }
  func.func @transform_2(%arg0: i32) -> (i32, i32) {
    %c0_i32 = arith.constant 0 : i32
    %c0_i32_0 = arith.constant 0 : i32
    %c0_i32_1 = arith.constant 0 : i32
    return %c0_i32, %c0_i32_0 : i32, i32
  }
  func.func @transform_3(%arg0: i32) -> (i32, i32) {
    %c0_i32 = arith.constant 0 : i32
    %c0_i32_0 = arith.constant 0 : i32
    %c0_i32_1 = arith.constant 0 : i32
    return %c0_i32, %c0_i32_0 : i32, i32
  }
  func.func @transform_4(%arg0: i32) -> (i32, i32) {
    %c0_i32 = arith.constant 0 : i32
    %c0_i32_0 = arith.constant 0 : i32
    %c0_i32_1 = arith.constant 0 : i32
    return %c0_i32, %c0_i32_0 : i32, i32
  }
  func.func @transform_5(%arg0: i32) -> (i32, i32) {
    %c0_i32 = arith.constant 0 : i32
    %c0_i32_0 = arith.constant 0 : i32
    return %arg0, %c0_i32 : i32, i32
  }
}

</mosaic_0001>

<bundles_post_ra>
// kernel: forward.1
= control target key start
LH: loop header
LB: loop body
LE: loop exit
PB: predicated region body
PF: predicated region fallthrough
CT: control target
= control target key end

     0   :  { %10 = vsyncpa [#allocation3], 0  ;;  %s923_s0 = inlined_call_operand.vmem [shape: s32[1,12,8], index: 0, kind: input, shape index: {}]   ;;  %s924_s1 = inlined_call_operand.hbm [shape: f32[5,128,64], index: 1, kind: input, shape index: {}]   ;;  %s925_s2 = inlined_call_operand.vmem [shape: f32[1,64], index: 2, kind: input, shape index: {}]   ;;  %s926_s3 = inlined_call_operand.hbm [shape: f32[64,128], index: 3, kind: input, shape index: {}]   ;;  %s927_s4 = inlined_call_operand.vmem [shape: f32[1,128], index: 4, kind: input, shape index: {}]   ;;  %s928_s5 = inlined_call_operand.vmem [shape: f32[8,128], index: 5, kind: output, shape index: {}]  }
   0x1   :  { %s18_s20 = sshll.u32 %s924_s1, 4  ;;  %s19_s20 = int_to_ptr.hbm [resolvable:$true] %s18_s20 }
   0x2   :  { %11 = vsyncpa [#allocation5], 0  ;;  %s692_s21 = smov [#allocation2]   ;;  %s33_s25 = sshll.u32 %s926_s3, 4  ;;  %s34_s25 = int_to_ptr.hbm [resolvable:$true] %s33_s25 }
   0x3   :  { %s20_s22 = sshll.u32 %s692_s21, 4  ;;  %s693_s26 = smov 128   ;;  %s21_s22 = int_to_ptr.vmem [resolvable:$true] %s20_s22 }
   0x4   :  { %s694_s27 = smov 8   ;;  %s695_s28 = smov [#allocation4]  }
   0x5   :  { %26 = dma.hbm_to_vmem [thread:$0]  %s19_s20, 10240, %s21_s22, [#allocation3], %s693_s26, %s693_s26, %s694_s27  }
   0x6   :  { %s35_s29 = sshll.u32 %s695_s28, 4  ;;  %s36_s29 = int_to_ptr.vmem [resolvable:$true] %s35_s29 }
   0x7   :  { %41 = dma.hbm_to_vmem [thread:$0]  %s34_s25, 1024, %s36_s29, [#allocation5], %s693_s26, %s693_s26, %s694_s27  }
   0x8   :  { %688 = dma.done.wait [#allocation3], 10240  }
   0x9   :  { %689 = vsyncadd [#allocation3], 4294957056 }
   0xa   :  { %690 = dma.done.wait [#allocation5], 1024  }
   0xb   :  { %691 = vsyncadd [#allocation5], 4294966272  ;;  %v54_v0 = vlaneseq  ;;  %v737_v2 = vld [vmem:[%s923_s0] sm:$0xff]  ;;  %v742_v3 = vld [vmem:[%s923_s0 + $0x8] sm:$0xf]  ;;  %vm477_vm12 = vcmask 523264  }
   0xc   :  { %v196_v4 = vld [vmem:[#allocation2 + $0xf8] sm:$0xff]  ;;  %v105_v5 = vperm.slane %v737_v2, 7  ;;  %v91_v6 = vperm.slane %v737_v2, 5  ;;  %v195_v7 = vld [vmem:[#allocation2 + $0xf0] sm:$0xff]  ;;  %v112_v8 = vperm.slane %v742_v3, 0  ;;  %v194_v9 = vld [vmem:[#allocation2 + $0xe8] sm:$0xff] }
   0xd   :  { %v58_v1 = vshrl.u32 %v54_v0, 7  ;;  %594 = vmatpush.msra.mxu2 %v196_v4  ;;  %197 = vmatpush.msra.mxu0 %v196_v4  ;;  %v179_v10 = vld [vmem:[#allocation2 + $0x78] sm:$0xff]  ;;  %v193_v11 = vld [vmem:[#allocation2 + $0xe0] sm:$0xff]  ;;  %v178_v13 = vld [vmem:[#allocation2 + $0x70] sm:$0xff]  ;;  %v98_v17 = vperm.slane %v737_v2, 6  ;;  %v63_v18 = vperm.slane %v737_v2, 1 }
   0xe   :  { %v361_v12 = vld [vmem:[#allocation2 + $0x1f8] sm:$0xff]  ;;  %238 = vmatpush.msra.mxu1 %v179_v10  ;;  %v360_v15 = vld [vmem:[#allocation2 + $0x1f0] sm:$0xff]  ;;  %v177_v16 = vld [vmem:[#allocation2 + $0x68] sm:$0xff]  ;;  %v70_v21 = vperm.slane %v737_v2, 2  ;;  %v77_v27 = vperm.slane %v737_v2, 3  ;;  %v56_v28 = vperm.slane %v737_v2, 0 }
   0xf   :  { %632 = vset.pattern.permute.xlu1 %v58_v1  ;;  %631 = vset.pattern.permute.xlu0 %v58_v1  ;;  %v192_v14 = vld [vmem:[#allocation2 + $0xd8] sm:$0xff]  ;;  %v191_v19 = vld [vmem:[#allocation2 + $0xd0] sm:$0xff]  ;;  %v359_v20 = vld [vmem:[#allocation2 + $0x1e8] sm:$0xff]  ;;  %v84_v30 = vperm.slane %v737_v2, 4  ;;  %v119_v33 = vperm.slane %v742_v3, 1  ;;  %v126_v34 = vperm.slane %v742_v3, 2 }
  0x10   :  { %633 = vset.pattern.permute.xlu2 %v58_v1  ;;  %595 = vmatpush.msra.mxu2 %v195_v7  ;;  %v190_v22 = vld [vmem:[#allocation2 + $0xc8] sm:$0xff]  ;;  %v176_v23 = vld [vmem:[#allocation2 + $0x60] sm:$0xff]  ;;  %v188_v26 = vld [vmem:[#allocation2 + $0xb8] sm:$0xff]  ;;  %v133_v35 = vperm.slane %v742_v3, 3 }
  0x11   :  { %198 = vmatpush.msra.mxu0 %v195_v7  ;;  %362 = vmatpush.msra.mxu3 %v361_v12  ;;  %v189_v24 = vld [vmem:[#allocation2 + $0xc0] sm:$0xff]  ;;  %v187_v29 = vld [vmem:[#allocation2 + $0xb0] sm:$0xff]  ;;  %v186_v31 = vld [vmem:[#allocation2 + $0xa8] sm:$0xff] }
  0x12   :  { %596 = vmatpush.msra.mxu2 %v194_v9  ;;  %239 = vmatpush.msra.mxu1 %v178_v13  ;;  %v358_v25 = vld [vmem:[#allocation2 + $0x1e0] sm:$0xff]  ;;  %v184_v36 = vld [vmem:[#allocation2 + $0x98] sm:$0xff]  ;;  %v183_v39 = vld [vmem:[#allocation2 + $0x90] sm:$0xff] }
  0x13   :  { %199 = vmatpush.msra.mxu0 %v194_v9  ;;  %363 = vmatpush.msra.mxu3 %v360_v15  ;;  %v185_v32 = vld [vmem:[#allocation2 + $0xa0] sm:$0xff]  ;;  %v175_v37 = vld [vmem:[#allocation2 + $0x58] sm:$0xff]  ;;  %v174_v40 = vld [vmem:[#allocation2 + $0x50] sm:$0xff] }
  0x14   :  { %597 = vmatpush.msra.mxu2 %v193_v11  ;;  %240 = vmatpush.msra.mxu1 %v177_v16  ;;  %v357_v38 = vld [vmem:[#allocation2 + $0x1d8] sm:$0xff]  ;;  %v356_v41 = vld [vmem:[#allocation2 + $0x1d0] sm:$0xff]  ;;  %v182_v42 = vld [vmem:[#allocation2 + $0x88] sm:$0xff] }
  0x15   :  { %200 = vmatpush.msra.mxu0 %v193_v11  ;;  %364 = vmatpush.msra.mxu3 %v359_v20  ;;  %v173_v43 = vld [vmem:[#allocation2 + $0x48] sm:$0xff]  ;;  %v181_v45 = vld [vmem:[#allocation2 + $0x80] sm:$0xff]  ;;  %v295_v48 = vld [vmem:[#allocation2 + $0x178] sm:$0xff] }
  0x16   :  { %598 = vmatpush.msra.mxu2 %v192_v14  ;;  %241 = vmatpush.msra.mxu1 %v176_v23  ;;  %v355_v44 = vld [vmem:[#allocation2 + $0x1c8] sm:$0xff]  ;;  %v172_v46 = vld [vmem:[#allocation2 + $0x40] sm:$0xff]  ;;  %v171_v49 = vld [vmem:[#allocation2 + $0x38] sm:$0xff] }
  0x17   :  { %110 = vperm.xlu1 %632, %v105_v5   ;;  %96 = vperm.xlu0 %631, %v91_v6   ;;  %v354_v47 = vld [vmem:[#allocation2 + $0x1c0] sm:$0xff]  ;;  %v353_v50 = vld [vmem:[#allocation2 + $0x1b8] sm:$0xff]  ;;  %v294_v51 = vld [vmem:[#allocation2 + $0x170] sm:$0xff] }
  0x18   :  { %117 = vperm.xlu2 %633, %v112_v8   ;;  %201 = vmatpush.msra.mxu0 %v192_v14  ;;  %v170_v52 = vld [vmem:[#allocation2 + $0x30] sm:$0xff]  ;;  %v293_v54 = vld [vmem:[#allocation2 + $0x168] sm:$0xff]  ;;  %v292_v57 = vld [vmem:[#allocation2 + $0x160] sm:$0xff] }
  0x19   :  { %599 = vmatpush.msra.mxu2 %v191_v19  ;;  %365 = vmatpush.msra.mxu3 %v358_v25  ;;  %v352_v53 = vld [vmem:[#allocation2 + $0x1b0] sm:$0xff]  ;;  %v169_v55 = vld [vmem:[#allocation2 + $0x28] sm:$0xff]  ;;  %v168_v58 = vld [vmem:[#allocation2 + $0x20] sm:$0xff]  ;;  %v757_v25 = vand.u32 127, %v54_v0  ;;  %v696_v0 = vmov 1.0  }
  0x1a   :  { %202 = vmatpush.msra.mxu0 %v191_v19  ;;  %242 = vmatpush.msra.mxu1 %v175_v37  ;;  %v351_v56 = vld [vmem:[#allocation2 + $0x1a8] sm:$0xff]  ;;  %v350_v59 = vld [vmem:[#allocation2 + $0x1a0] sm:$0xff]  ;;  %v291_v60 = vld [vmem:[#allocation2 + $0x158] sm:$0xff] }
  0x1b   :  { %600 = vmatpush.msra.mxu2 %v190_v22  ;;  %366 = vmatpush.msra.mxu3 %v357_v38  ;;  %v167_v61 = vld [vmem:[#allocation2 + $0x18] sm:$0xff]  ;;  %v290_v1 = vld [vmem:[#allocation2 + $0x150] sm:$0xff]  ;;  %v289_v5 = vld [vmem:[#allocation2 + $0x148] sm:$0xff]  ;;  %vm533_vm13 = vcmp.lt.s32.totalorder %v757_v25, 10 }
  0x1c   :  { %203 = vmatpush.msra.mxu0 %v190_v22  ;;  %243 = vmatpush.msra.mxu1 %v174_v40  ;;  %v349_v62 = vld [vmem:[#allocation2 + $0x198] sm:$0xff]  ;;  %v166_v2 = vld [vmem:[#allocation2 + $0x10] sm:$0xff]  ;;  %v165_v6 = vld [vmem:[#allocation2 + $0x8] sm:$0xff] }
  0x1d   :  { %601 = vmatpush.msra.mxu2 %v189_v24  ;;  %367 = vmatpush.msra.mxu3 %v356_v41  ;;  %v427_v63 = vld [vmem:[#allocation2 + $0x278] sm:$0xff]  ;;  %v348_v3 = vld [vmem:[#allocation2 + $0x190] sm:$0xff]  ;;  %v347_v7 = vld [vmem:[#allocation2 + $0x188] sm:$0xff] }
  0x1e   :  { %204 = vmatpush.msra.mxu0 %v189_v24  ;;  %244 = vmatpush.msra.mxu1 %v173_v43  ;;  %v426_v4 = vld [vmem:[#allocation2 + $0x270] sm:$0xff]  ;;  %v425_v8 = vld [vmem:[#allocation2 + $0x268] sm:$0xff]  ;;  %v288_v9 = vld [vmem:[#allocation2 + $0x140] sm:$0xff] }
  0x1f   :  { %103 = vperm.xlu0 %631, %v98_v17   ;;  %68 = vperm.xlu1 %632, %v63_v18   ;;  %v164_v10 = vld [vmem:[#allocation2] sm:$0xff]  ;;  %v287_v13 = vld [vmem:[#allocation2 + $0x138] sm:$0xff]  ;;  %v286_v15 = vld [vmem:[#allocation2 + $0x130] sm:$0xff] }
  0x20   :  { %75 = vperm.xlu2 %633, %v70_v21   ;;  %602 = vmatpush.msra.mxu2 %v188_v26  ;;  %v346_v11 = vld [vmem:[#allocation2 + $0x180] sm:$0xff]  ;;  %v423_v14 = vld [vmem:[#allocation2 + $0x258] sm:$0xff]  ;;  %v422_v16 = vld [vmem:[#allocation2 + $0x250] sm:$0xff] }
  0x21   :  { %205 = vmatpush.msra.mxu0 %v188_v26  ;;  %368 = vmatpush.msra.mxu3 %v355_v44  ;;  %v424_v12 = vld [vmem:[#allocation2 + $0x260] sm:$0xff]  ;;  %v285_v17 = vld [vmem:[#allocation2 + $0x128] sm:$0xff]  ;;  %v283_v21 = vld [vmem:[#allocation2 + $0x118] sm:$0xff] }
  0x22   :  { %603 = vmatpush.msra.mxu2 %v187_v29  ;;  %245 = vmatpush.msra.mxu1 %v172_v46  ;;  %v421_v18 = vld [vmem:[#allocation2 + $0x248] sm:$0xff]  ;;  %v284_v19 = vld [vmem:[#allocation2 + $0x120] sm:$0xff]  ;;  %v419_v22 = vld [vmem:[#allocation2 + $0x238] sm:$0xff] }
  0x23   :  { %206 = vmatpush.msra.mxu0 %v187_v29  ;;  %369 = vmatpush.msra.mxu3 %v354_v47  ;;  %v420_v20 = vld [vmem:[#allocation2 + $0x240] sm:$0xff]  ;;  %v282_v23 = vld [vmem:[#allocation2 + $0x110] sm:$0xff]  ;;  %v281_v26 = vld [vmem:[#allocation2 + $0x108] sm:$0xff] }
  0x24   :  { %604 = vmatpush.msra.mxu2 %v186_v31  ;;  %246 = vmatpush.msra.mxu1 %v171_v49  ;;  %v418_v24 = vld [vmem:[#allocation2 + $0x230] sm:$0xff] }
  0x25   :  { %207 = vmatpush.msra.mxu0 %v186_v31  ;;  %370 = vmatpush.msra.mxu3 %v353_v50  ;;  %v280_v31 = vld [vmem:[#allocation2 + $0x100] sm:$0xff] }
  0x26   :  { %605 = vmatpush.msra.mxu2 %v185_v32  ;;  %247 = vmatpush.msra.mxu1 %v170_v52  ;;  %v505_v52 = vld [vmem:[#allocation4 + $0x38] sm:$0xff] }
  0x27   :  { %82 = vperm.xlu0 %631, %v77_v27   ;;  %61 = vperm.xlu1 %632, %v56_v28   ;;  %v417_v27 = vld [vmem:[#allocation2 + $0x228] sm:$0xff]  ;;  %v416_v28 = vld [vmem:[#allocation2 + $0x220] sm:$0xff] }
  0x28   :  { %89 = vperm.xlu2 %633, %v84_v30   ;;  %208 = vmatpush.msra.mxu0 %v185_v32 }
  0x29   :  { %606 = vmatpush.msra.mxu2 %v184_v36  ;;  %371 = vmatpush.msra.mxu3 %v352_v53 }
  0x2a   :  { %209 = vmatpush.msra.mxu0 %v184_v36  ;;  %248 = vmatpush.msra.mxu1 %v169_v55  ;;  %v413_v36 = vld [vmem:[#allocation2 + $0x208] sm:$0xff] }
  0x2b   :  { %607 = vmatpush.msra.mxu2 %v183_v39  ;;  %372 = vmatpush.msra.mxu3 %v351_v56 }
  0x2c   :  { %210 = vmatpush.msra.mxu0 %v183_v39  ;;  %249 = vmatpush.msra.mxu1 %v168_v58  ;;  %v412_v39 = vld [vmem:[#allocation2 + $0x200] sm:$0xff] }
  0x2d   :  { %608 = vmatpush.msra.mxu2 %v182_v42  ;;  %373 = vmatpush.msra.mxu3 %v350_v59 }
  0x2e   :  { %211 = vmatpush.msra.mxu0 %v182_v42  ;;  %250 = vmatpush.msra.mxu1 %v167_v61 }
  0x2f   :  { %124 = vperm.xlu0 %631, %v119_v33   ;;  %131 = vperm.xlu1 %632, %v126_v34   ;;  %v415_v33 = vld [vmem:[#allocation2 + $0x218] sm:$0xff]  ;;  %v414_v34 = vld [vmem:[#allocation2 + $0x210] sm:$0xff] }
  0x30   :  { %138 = vperm.xlu2 %633, %v133_v35   ;;  %609 = vmatpush.msra.mxu2 %v181_v45 }
  0x31   :  { %212 = vmatpush.msra.mxu0 %v181_v45  ;;  %374 = vmatpush.msra.mxu3 %v349_v62  ;;  %v503_v62 = vld [vmem:[#allocation4 + $0x28] sm:$0xff] }
  0x32   :  { %296 = vmatpush.msrb.mxu2 %v295_v48  ;;  %251 = vmatpush.msra.mxu1 %v166_v2 }
  0x33   :  { %428 = vmatpush.msrb.mxu0 %v427_v63  ;;  %375 = vmatpush.msra.mxu3 %v348_v3  ;;  %v502_v3 = vld [vmem:[#allocation4 + $0x20] sm:$0xff] }
  0x34   :  { %297 = vmatpush.msrb.mxu2 %v294_v51  ;;  %252 = vmatpush.msra.mxu1 %v165_v6 }
  0x35   :  { %429 = vmatpush.msrb.mxu0 %v426_v4  ;;  %376 = vmatpush.msra.mxu3 %v347_v7  ;;  %v501_v7 = vld [vmem:[#allocation4 + $0x18] sm:$0xff] }
  0x36   :  { %298 = vmatpush.msrb.mxu2 %v293_v54  ;;  %253 = vmatpush.msra.mxu1 %v164_v10 }
  0x37   :  { %430 = vmatpush.msrb.mxu0 %v425_v8  ;;  %377 = vmatpush.msra.mxu3 %v346_v11 }
  0x38   :  { %299 = vmatpush.msrb.mxu2 %v292_v57  ;;  %521 = vmatpush.msrb.mxu1 %v505_v52  ;;  %v504_v57 = vld [vmem:[#allocation4 + $0x30] sm:$0xff] }
  0x39   :  { %431 = vmatpush.msrb.mxu0 %v424_v12  ;;  %610 = vmatpush.msrb.mxu3 %v427_v63 }
  0x3a   :  { %300 = vmatpush.msrb.mxu2 %v291_v60  ;;  %522 = vmatpush.msrb.mxu1 %v504_v57 }
  0x3b   :  { %432 = vmatpush.msrb.mxu0 %v423_v14  ;;  %611 = vmatpush.msrb.mxu3 %v426_v4 }
  0x3c   :  { %301 = vmatpush.msrb.mxu2 %v290_v1  ;;  %523 = vmatpush.msrb.mxu1 %v503_v62 }
  0x3d   :  { %433 = vmatpush.msrb.mxu0 %v422_v16  ;;  %612 = vmatpush.msrb.mxu3 %v425_v8 }
  0x3e   :  { %302 = vmatpush.msrb.mxu2 %v289_v5  ;;  %524 = vmatpush.msrb.mxu1 %v502_v3 }
  0x3f   :  { %434 = vmatpush.msrb.mxu0 %v421_v18  ;;  %613 = vmatpush.msrb.mxu3 %v424_v12  ;;  %v500_v12 = vld [vmem:[#allocation4 + $0x10] sm:$0xff] }
  0x40   :  { %303 = vmatpush.msrb.mxu2 %v288_v9  ;;  %525 = vmatpush.msrb.mxu1 %v501_v7 }
  0x41   :  { %435 = vmatpush.msrb.mxu0 %v420_v20  ;;  %614 = vmatpush.msrb.mxu3 %v423_v14 }
  0x42   :  { %304 = vmatpush.msrb.mxu2 %v287_v13  ;;  %526 = vmatpush.msrb.mxu1 %v500_v12 }
  0x43   :  { %436 = vmatpush.msrb.mxu0 %v419_v22  ;;  %615 = vmatpush.msrb.mxu3 %v422_v16 }
  0x44   :  { %305 = vmatpush.msrb.mxu2 %v286_v15 }
  0x45   :  { %437 = vmatpush.msrb.mxu0 %v418_v24  ;;  %616 = vmatpush.msrb.mxu3 %v421_v18 }
  0x46   :  { %306 = vmatpush.msrb.mxu2 %v285_v17 }
  0x47   :  { %438 = vmatpush.msrb.mxu0 %v417_v27  ;;  %617 = vmatpush.msrb.mxu3 %v420_v20 }
  0x48   :  { %307 = vmatpush.msrb.mxu2 %v284_v19 }
  0x49   :  { %439 = vmatpush.msrb.mxu0 %v416_v28  ;;  %618 = vmatpush.msrb.mxu3 %v419_v22 }
  0x4a   :  { %308 = vmatpush.msrb.mxu2 %v283_v21 }
  0x4b   :  { %440 = vmatpush.msrb.mxu0 %v415_v33  ;;  %619 = vmatpush.msrb.mxu3 %v418_v24 }
  0x4c   :  { %309 = vmatpush.msrb.mxu2 %v282_v23 }
  0x4d   :  { %441 = vmatpush.msrb.mxu0 %v414_v34  ;;  %620 = vmatpush.msrb.mxu3 %v417_v27 }
  0x4e   :  { %310 = vmatpush.msrb.mxu2 %v281_v26 }
  0x4f   :  { %442 = vmatpush.msrb.mxu0 %v413_v36  ;;  %621 = vmatpush.msrb.mxu3 %v416_v28  ;;  %v499_v28 = vld [vmem:[#allocation4 + $0x8] sm:$0xff] }
  0x50   :  { %311 = vmatpush.msrb.mxu2 %v280_v31  ;;  %527 = vmatpush.msrb.mxu1 %v499_v28 }
  0x51   :  { %443 = vmatpush.msrb.mxu0 %v412_v39  ;;  %622 = vmatpush.msrb.mxu3 %v415_v33 }
  0x53   :  { %623 = vmatpush.msrb.mxu3 %v414_v34 }
  0x55   :  { %624 = vmatpush.msrb.mxu3 %v413_v36 }
  0x57   :  { %625 = vmatpush.msrb.mxu3 %v412_v39 }
  0x72   :  { %v767_v35 = vpop.permute.xlu2 %117 }
  0x73   :  { %vm148_vm7 = vcmp.eq.s32.totalorder %v767_v35, %v757_v25 }
  0x7a   :  { %v76_v41 = vpop.permute.xlu2 %75 }
  0x7b   :  { %vm142_vm3 = vcmp.eq.s32.totalorder %v76_v41, %v757_v25 }
  0x82   :  { %v90_v45 = vpop.permute.xlu2 %89 }
  0x83   :  { %vm144_vm8 = vcmp.eq.s32.totalorder %v90_v45, %v757_v25 }
  0x89   :  { %v111_v29 = vpop.permute.xlu1 %110  ;;  %v97_v30 = vpop.permute.xlu0 %96 }
  0x8a   :  { %vm760_vm0 = vcmp.eq.s32.totalorder %v97_v30, %v757_v25  ;;  %vm783_vm4 = vcmp.eq.s32.totalorder %v111_v29, %v757_v25  ;;  %v139_v48 = vpop.permute.xlu2 %138  ;;  %v498_v29 = vld [vmem:[#allocation4] sm:$0xff] }
  0x8b   :  { %557 = vmatmul.msk.f32.vlgmr.msra.gmra.mxu2 %vm760_vm0, %v696_v0  ;;  %vm151_vm11 = vcmp.eq.s32.totalorder %v139_v48, %v757_v25  ;;  %528 = vmatpush.msrb.mxu1 %v498_v29 }
  0x91   :  { %v104_v37 = vpop.permute.xlu0 %103  ;;  %v69_v38 = vpop.permute.xlu1 %68 }
  0x92   :  { %vm770_vm1 = vcmp.eq.s32.totalorder %v104_v37, %v757_v25  ;;  %vm141_vm2 = vcmp.eq.s32.totalorder %v69_v38, %v757_v25 }
  0x93   :  { %558 = vmatmul.msk.f32.gmra.mxu2 %vm770_vm1, %v696_v0  ;;  %553 = vmatmul.msk.f32.vlgmr.msra.gmra.mxu0 %vm141_vm2, %v696_v0 }
  0x99   :  { %v83_v42 = vpop.permute.xlu0 %82  ;;  %v62_v43 = vpop.permute.xlu1 %61 }
  0x9a   :  { %vm143_vm5 = vcmp.eq.s32.totalorder %v83_v42, %v757_v25  ;;  %vm140_vm6 = vcmp.eq.s32.totalorder %v62_v43, %v757_v25 }
  0x9b   :  { %559 = vmatmul.msk.f32.gmra.mxu2 %vm783_vm4, %v696_v0  ;;  %577 = vmatmul.msk.f32.vlgmr.msra.gmra.mxu3 %vm143_vm5, %v696_v0 }
  0x9c   :  { %554 = vmatmul.msk.f32.gmra.mxu0 %vm142_vm3, %v696_v0  ;;  %561 = vmatmul.msk.f32.vlgmr.msra.gmra.mxu1 %vm140_vm6, %v696_v0 }
  0xa1   :  { %v125_v46 = vpop.permute.xlu0 %124  ;;  %v132_v47 = vpop.permute.xlu1 %131 }
  0xa2   :  { %vm149_vm9 = vcmp.eq.s32.totalorder %v125_v46, %v757_v25  ;;  %vm150_vm10 = vcmp.eq.s32.totalorder %v132_v47, %v757_v25 }
  0xa3   :  { %560 = vmatmul.msk.f32.gmra.mxu2 %vm148_vm7, %v696_v0  ;;  %578 = vmatmul.msk.f32.gmra.mxu3 %vm144_vm8, %v696_v0 }
  0xa4   :  { %555 = vmatmul.msk.f32.gmra.mxu0 %vm143_vm5, %v696_v0  ;;  %562 = vmatmul.msk.f32.gmra.mxu1 %vm141_vm2, %v696_v0 }
  0xab   :  { %569 = vmatmul.msk.f32.vlgmr.msrb.gmra.mxu2 %vm142_vm3, %v696_v0  ;;  %579 = vmatmul.msk.f32.gmra.mxu3 %vm760_vm0, %v696_v0 }
  0xac   :  { %556 = vmatmul.msk.f32.gmra.mxu0 %vm144_vm8, %v696_v0  ;;  %563 = vmatmul.msk.f32.gmra.mxu1 %vm142_vm3, %v696_v0 }
  0xb3   :  { %570 = vmatmul.msk.f32.gmra.mxu2 %vm143_vm5, %v696_v0  ;;  %580 = vmatmul.msk.f32.gmra.mxu3 %vm770_vm1, %v696_v0 }
  0xb4   :  { %564 = vmatmul.msk.f32.gmra.mxu1 %vm143_vm5, %v696_v0  ;;  %585 = vmatmul.msk.f32.vlgmr.msrb.gmra.mxu0 %vm144_vm8, %v696_v0 }
  0xbb   :  { %571 = vmatmul.msk.f32.gmra.mxu2 %vm144_vm8, %v696_v0  ;;  %581 = vmatmul.msk.f32.gmra.mxu3 %vm783_vm4, %v696_v0 }
  0xbc   :  { %565 = vmatmul.msk.f32.gmra.mxu1 %vm144_vm8, %v696_v0  ;;  %586 = vmatmul.msk.f32.gmra.mxu0 %vm760_vm0, %v696_v0 }
  0xc3   :  { %572 = vmatmul.msk.f32.gmra.mxu2 %vm760_vm0, %v696_v0  ;;  %582 = vmatmul.msk.f32.gmra.mxu3 %vm148_vm7, %v696_v0 }
  0xc4   :  { %566 = vmatmul.msk.f32.gmra.mxu1 %vm760_vm0, %v696_v0  ;;  %587 = vmatmul.msk.f32.gmra.mxu0 %vm770_vm1, %v696_v0 }
  0xcb   :  { %573 = vmatmul.msk.f32.gmra.mxu2 %vm770_vm1, %v696_v0  ;;  %583 = vmatmul.msk.f32.gmra.mxu3 %vm149_vm9, %v696_v0 }
  0xcc   :  { %567 = vmatmul.msk.f32.gmra.mxu1 %vm770_vm1, %v696_v0  ;;  %588 = vmatmul.msk.f32.gmra.mxu0 %vm783_vm4, %v696_v0 }
  0xd3   :  { %574 = vmatmul.msk.f32.gmra.mxu2 %vm783_vm4, %v696_v0  ;;  %584 = vmatmul.msk.f32.gmra.mxu3 %vm150_vm10, %v696_v0 }
  0xd4   :  { %568 = vmatmul.msk.f32.gmra.mxu1 %vm783_vm4, %v696_v0  ;;  %589 = vmatmul.msk.f32.gmra.mxu0 %vm148_vm7, %v696_v0 }
  0xdb   :  { %575 = vmatmul.msk.f32.gmra.mxu2 %vm148_vm7, %v696_v0  ;;  %592 = vmatmul.msk.f32.vlgmr.msrb.gmra.mxu3 %vm151_vm11, %v696_v0 }
  0xdc   :  { %590 = vmatmul.msk.f32.gmra.mxu0 %vm149_vm9, %v696_v0 }
  0xe3   :  { %576 = vmatmul.msk.f32.gmra.mxu2 %vm149_vm9, %v696_v0 }
  0xe4   :  { %591 = vmatmul.msk.f32.gmra.mxu0 %vm150_vm10, %v696_v0 }
 0x10e   :  { %v226_v49 = vpop.f32.mrf.mxu2 }
 0x110   :  { %v214_v50 = vpop.f32.mrf.mxu0 }
 0x116   :  { %v229_v51 = vpop.f32.mrf.mxu2 }
 0x119   :  { %v217_v53 = vpop.f32.mrf.mxu0  ;;  %v255_v54 = vpop.f32.mrf.mxu1 }
 0x11a   :  { %v256_v17 = vadd.f32 %v255_v54, %v214_v50 }
 0x11e   :  { %v892_v55 = vpop.f32.mrf.mxu2  ;;  %v379_v56 = vpop.f32.mrf.mxu3 }
 0x121   :  { %v894_v58 = vpop.f32.mrf.mxu0  ;;  %v258_v59 = vpop.f32.mrf.mxu1 }
 0x122   :  { %v259_v26 = vadd.f32 %v258_v59, %v217_v53 }
 0x126   :  { %v896_v60 = vpop.f32.mrf.mxu2  ;;  %v382_v61 = vpop.f32.mrf.mxu3 }
 0x129   :  { %v223_v63 = vpop.f32.mrf.mxu0  ;;  %v261_v4 = vpop.f32.mrf.mxu1 }
 0x12e   :  { %v313_v1 = vpop.f32.mrf.mxu2  ;;  %v898_v2 = vpop.f32.mrf.mxu3 }
 0x12f   :  { %v337_v18 = vadd.f32 %v313_v1, %v256_v17 }
 0x131   :  { %v445_v5 = vpop.f32.mrf.mxu0  ;;  %v264_v10 = vpop.f32.mrf.mxu1  ;;  %v403_v21 = vadd.f32 %v379_v56, %v337_v18  ;;  %v634_v18 = vld [vmem:[%s925_s2] ss:$0 sm:$0xff] }
 0x132   :  { %v265_v53 = vadd.f32 %v264_v10, %v223_v63 }
 0x133   :  { %v469_v30 = vadd.f32 %v445_v5, %v403_v21 }
 0x135   :  { %v478_v34 = vsel %vm477_vm12, %v469_v30, -inf }
 0x136   :  { %v316_v6 = vpop.f32.mrf.mxu2  ;;  %v388_v8 = vpop.f32.mrf.mxu3 }
 0x137   :  { %v338_v31 = vadd.f32 %v316_v6, %v259_v26 }
 0x139   :  { %v448_v9 = vpop.f32.mrf.mxu0  ;;  %v267_v15 = vpop.f32.mrf.mxu1  ;;  %v404_v35 = vadd.f32 %v382_v61, %v338_v31 }
 0x13a   :  { %v268_v22 = vadd.f32 %v267_v15, %v226_v49 }
 0x13b   :  { %v470_v43 = vadd.f32 %v448_v9, %v404_v35 }
 0x13d   :  { %v479_v47 = vsel %vm477_vm12, %v470_v43, -inf }
 0x13e   :  { %v319_v11 = vpop.f32.mrf.mxu2  ;;  %v391_v14 = vpop.f32.mrf.mxu3 }
 0x141   :  { %v451_v13 = vpop.f32.mrf.mxu0  ;;  %v270_v23 = vpop.f32.mrf.mxu1 }
 0x142   :  { %v271_v36 = vadd.f32 %v270_v23, %v229_v51  ;;  %v262_v51 = vadd.f32 %v261_v4, %v894_v58 }
 0x144   :  { %v339_v59 = vadd.f32 %v319_v11, %v262_v51 }
 0x146   :  { %v322_v16 = vpop.f32.mrf.mxu2  ;;  %v394_v20 = vpop.f32.mrf.mxu3  ;;  %v405_v3 = vadd.f32 %v898_v2, %v339_v59 }
 0x147   :  { %v340_v61 = vadd.f32 %v322_v16, %v265_v53 }
 0x149   :  { %v454_v19 = vpop.f32.mrf.mxu0  ;;  %v273_v42 = vpop.f32.mrf.mxu1  ;;  %v406_v5 = vadd.f32 %v388_v8, %v340_v61 }
 0x14a   :  { %v274_v48 = vadd.f32 %v273_v42, %v892_v55 }
 0x14b   :  { %v472_v15 = vadd.f32 %v454_v19, %v406_v5 }
 0x14d   :  { %v481_v16 = vsel %vm477_vm12, %v472_v15, -inf }
 0x14e   :  { %v325_v24 = vpop.f32.mrf.mxu2  ;;  %v397_v38 = vpop.f32.mrf.mxu3 }
 0x14f   :  { %v341_v27 = vadd.f32 %v325_v24, %v268_v22 }
 0x151   :  { %v407_v32 = vadd.f32 %v391_v14, %v341_v27  ;;  %v457_v0 = vpop.f32.mrf.mxu0  ;;  %v276_v62 = vpop.f32.mrf.mxu1  ;;  %v471_v14 = vadd.f32 %v451_v13, %v405_v3 }
 0x152   :  { %v277_v6 = vadd.f32 %v276_v62, %v896_v60 }
 0x153   :  { %v473_v33 = vadd.f32 %v457_v0, %v407_v32  ;;  %v480_v11 = vsel %vm477_vm12, %v471_v14, -inf }
 0x155   :  { %v482_v37 = vsel %vm477_vm12, %v473_v33, -inf }
 0x156   :  { %v483_v39 = vmax.f32 %v478_v34, %v482_v37  ;;  %v328_v40 = vpop.f32.mrf.mxu2  ;;  %v400_v56 = vpop.f32.mrf.mxu3 }
 0x157   :  { %v342_v41 = vadd.f32 %v328_v40, %v271_v36 }
 0x159   :  { %v408_v44 = vadd.f32 %v394_v20, %v342_v41  ;;  %v460_v45 = vpop.f32.mrf.mxu0  ;;  %v635_v20 = vld [vmem:[%s927_s4] ss:$0 sm:$0xff] }
 0x15b   :  { %v474_v46 = vadd.f32 %v460_v45, %v408_v44 }
 0x15d   :  { %v484_v49 = vsel %vm477_vm12, %v474_v46, -inf }
 0x15e   :  { %v485_v50 = vmax.f32 %v479_v47, %v484_v49  ;;  %v331_v52 = vpop.f32.mrf.mxu2  ;;  %v466_v63 = vpop.f32.mrf.mxu3 }
 0x15f   :  { %v343_v54 = vadd.f32 %v331_v52, %v274_v48 }
 0x160   :  { %v490_v57 = vmax.f32 %v483_v39, %v485_v50 }
 0x161   :  { %v409_v1 = vadd.f32 %v397_v38, %v343_v54  ;;  %v463_v55 = vpop.f32.mrf.mxu0 }
 0x163   :  { %v475_v9 = vadd.f32 %v463_v55, %v409_v1 }
 0x165   :  { %v486_v4 = vsel %vm477_vm12, %v475_v9, -inf }
 0x166   :  { %v334_v7 = vpop.f32.mrf.mxu2  ;;  %v487_v8 = vmax.f32 %v480_v11, %v486_v4 }
 0x167   :  { %v344_v12 = vadd.f32 %v334_v7, %v277_v6 }
 0x169   :  { %v410_v58 = vadd.f32 %v400_v56, %v344_v12 }
 0x16b   :  { %v476_v10 = vadd.f32 %v466_v63, %v410_v58 }
 0x16d   :  { %v488_v2 = vsel %vm477_vm12, %v476_v10, -inf }
 0x16e   :  { %v489_v17 = vmax.f32 %v481_v16, %v488_v2 }
 0x170   :  { %v491_v60 = vmax.f32 %v487_v8, %v489_v17 }
 0x172   :  { %v492_v13 = vmax.f32 %v490_v57, %v491_v60 }
 0x174   :  { %v497_v19 = vadd.f32 %v634_v18, %v492_v13 }
 0x176   :  { %593 = vmatmul.msk.f32.vlgmr.msrb.gmra.mxu1 %vm477_vm12, %v497_v19 }
 0x1f3   :  { %v530_v21 = vpop.f32.mrf.mxu1 }
 0x1f4   :  { %v531_v22 = vadd.f32 %v635_v20, %v530_v21 }
 0x1f6   :  { %v534_v23 = vsel %vm533_vm13, %v531_v22, -1e+30 }
 0x1f7   :  { %535 = vmax.xlane.f32.xlu0 %v534_v23 }
 0x26a   :  { %v536_v24 = vpop.xlane.xlu0 %535 }
 0x26b   :  { %v537_v26 = vsub.f32 %v534_v23, %v536_v24 }
 0x26d   :  { %v538_v27 = vmul.f32 1.442695, %v537_v26 }
 0x26f   :  { %636 = vpow2.f32 %v538_v27 }
 0x275   :  { %v637_v28 = vpop.eup %636 }
 0x276   :  { %v540_v29 = vsel %vm533_vm13, %v637_v28, 0.0 }
 0x277   :  { %541 = vadd.xlane.f32.xlu1 %v540_v29 }
 0x2ea   :  { %v542_v30 = vpop.xlane.xlu1 %541 }
 0x2eb   :  { %638 = vlog2.f32 %v542_v30 }
 0x2f1   :  { %v639_v31 = vpop.eup %638 }
 0x2f2   :  { %v544_v32 = vmul.f32 0.6931472, %v639_v31 }
 0x2f4   :  { %v545_v0 = vsub.f32 %v537_v26, %v544_v32 }
 0x2f6   :  { %546 = vst [vmem:[%s928_s5] sm:$0xff] %v545_v0 }
 0x2f7   :  { %551 = vsyncpa [#allocation3], 1 }
 0x2f8   :  { %552 = vsyncpa [#allocation5], 1 }

</bundles_post_ra>
